<compile_context>
chip_gen: v7x
topology: tpu7x:2x2x1
jax: 0.10.0
libtpu: 0.0.40
codegen_flags: <defaults>
</compile_context>

<pallas_src>
import jax
import jax.numpy as jnp
from jax.experimental import pallas as pl
from jax.experimental.pallas import tpu as pltpu


def actor_kernel(x_ref, w1t_ref, b1_ref, w2_ref, b2_ref, o_ref):
    """Fused 5->4->1 MLP tile, batch-in-lanes layout.

    x_ref  : [5, TB]  VMEM  (features x batch-lanes)
    w1t_ref: [4, 5]   VMEM  (fc1 weight, pre-transposed: hidden x input)
    b1_ref : [4, 1]   VMEM  (fc1 bias as a column)
    w2_ref : [4, 1]   SMEM  (fc_mu weight scalars)
    b2_ref : [1, 1]   SMEM  (fc_mu bias scalar)
    o_ref  : [1, TB]  VMEM  (lane-dense output row)
    """
    x = x_ref[...]                      # [5, TB] f32
    tb = x.shape[1]
    w1t = w1t_ref[...]                  # [4, 5]

    # Hidden layer on the full [4, TB] slab: 5 broadcast-FMAs on the VPU.
    h = b1_ref[...]                     # [4, 1] -> broadcasts over lanes
    for k in range(5):
        h = h + w1t[:, k:k + 1] * x[k:k + 1, :]          # [4,1]*[1,TB] -> [4,TB]

    # leaky_relu (slope 0.01 < 1): max(h, 0.01*h) == where(h>=0, h, 0.01*h)
    h = jnp.maximum(h, jnp.float32(0.01) * h)             # [4, TB]

    # Output layer: fold the 4 hidden rows into one [1, TB] row with scalar FMAs.
    acc = jnp.full((1, tb), b2_ref[0, 0], jnp.float32)
    for j in range(4):
        acc = acc + w2_ref[j, 0] * h[j:j + 1, :]
    o_ref[...] = acc.astype(o_ref.dtype)


def actor_forward_feature_major(x_t, w1, b1, w2, b2, *, block_b=65536):
    """x_t: [5, B_pad] feature-major (B_pad a multiple of 128) -> [1, B_pad]."""
    f_in, b_pad = x_t.shape
    f_hid = w1.shape[1]
    f_out = w2.shape[1]
    assert b_pad % 128 == 0, "feature-major batch axis must be a multiple of 128"

    # Tile the lane (batch) axis.  Cap the tile so the grid has >= 2 steps when
    # the batch allows it (dual-TensorCore sharding on v7x via "parallel").
    half = max(128, pl.cdiv(pl.cdiv(b_pad, 2), 128) * 128)
    tb = max(128, min(block_b, half, b_pad))
    b_pad2 = pl.cdiv(b_pad, tb) * tb
    if b_pad2 != b_pad:
        x_t = jnp.pad(x_t, ((0, 0), (0, b_pad2 - b_pad)))
        b_pad = b_pad2
    grid = (b_pad // tb,)

    w1t = w1.T                          # [4, 5]
    b1c = b1.reshape(f_hid, 1)          # [4, 1]

    out_t = pl.pallas_call(
        actor_kernel,
        out_shape=jax.ShapeDtypeStruct((f_out, b_pad), jnp.float32),
        grid=grid,
        in_specs=[
            # Streamed activation tile (auto double-buffered by the pipeline).
            pl.BlockSpec((f_in, tb), lambda i: (0, i)),
            # Tiny fc1 params: VMEM-resident, constant index_map.
            pl.BlockSpec((f_hid, f_in), lambda i: (0, 0)),
            pl.BlockSpec((f_hid, 1), lambda i: (0, 0)),
            # fc_mu params: SMEM scalars for the output fold.
            pl.BlockSpec((f_hid, f_out), lambda i: (0, 0),
                         memory_space=pltpu.MemorySpace.SMEM),
            pl.BlockSpec((1, f_out), lambda i: (0, 0),
                         memory_space=pltpu.MemorySpace.SMEM),
        ],
        out_specs=pl.BlockSpec((f_out, tb), lambda i: (0, i)),
        compiler_params=pltpu.CompilerParams(
            dimension_semantics=("parallel",)),   # shard batch tiles across TCs
    )(x_t, w1t, b1c, w2, b2)
    return out_t


def actor_forward(x, w1, b1, w2, b2, *, block_b=65536):
    """PyTorch-facing API: x [B, 5] f32 -> [B, 1] f32.

    == fc_mu(leaky_relu(fc1(x))) with fc1: 5->4, fc_mu: 4->1, slope 0.01.
    """
    B, f_in = x.shape
    # Layout plumbing only: pad batch to a lane multiple and go feature-major.
    # (Callers that can keep activations feature-major should call
    #  actor_forward_feature_major directly and skip this HBM round-trip.)
    b_pad = pl.cdiv(B, 128) * 128
    x_t = jnp.pad(x, ((0, b_pad - B), (0, 0))).T          # [5, b_pad]
    out_t = actor_forward_feature_major(x_t, w1, b1, w2, b2, block_b=block_b)
    return out_t[:, :B].T                                 # back to [B, 1]


def init_params(key):
    """Deterministic init mirroring nn.Linear's U(-1/sqrt(fan_in), 1/sqrt(fan_in))."""
    k1, k2, k3, k4 = jax.random.split(key, 4)
    in1, out1 = 5, 4
    in2, out2 = 4, 1
    bnd1 = 1.0 / jnp.sqrt(jnp.float32(in1))
    bnd2 = 1.0 / jnp.sqrt(jnp.float32(in2))
    w1 = jax.random.uniform(k1, (in1, out1), jnp.float32, -bnd1, bnd1)
    b1 = jax.random.uniform(k2, (1, out1), jnp.float32, -bnd1, bnd1)
    w2 = jax.random.uniform(k3, (in2, out2), jnp.float32, -bnd2, bnd2)
    b2 = jax.random.uniform(k4, (1, out2), jnp.float32, -bnd2, bnd2)
    return w1, b1, w2, b2


def reference_forward(x, w1, b1, w2, b2):
    h = x @ w1 + b1
    h = jnp.where(h >= 0, h, 0.01 * h)
    return h @ w2 + b2


if __name__ == "__main__":
    key = jax.random.PRNGKey(0)
    kx, kx2, kp = jax.random.split(key, 3)
    w1, b1, w2, b2 = init_params(kp)

    # Small batch (spec-sized): obs dim = 5, batch = 8.
    batch = 8
    x = jax.random.normal(kx, (batch, 5), jnp.float32)
    out = jax.block_until_ready(actor_forward(x, w1, b1, w2, b2))
    ref = reference_forward(x, w1, b1, w2, b2)
    assert out.shape == (batch, 1), out.shape
    assert jnp.allclose(out, ref, atol=1e-5, rtol=1e-5), (out, ref)

    # Larger batch exercising the multi-tile grid path (grid length >= 2).
    batch2 = 1000
    x2 = jax.random.normal(kx2, (batch2, 5), jnp.float32)
    out2 = jax.block_until_ready(actor_forward(x2, w1, b1, w2, b2))
    ref2 = reference_forward(x2, w1, b1, w2, b2)
    assert out2.shape == (batch2, 1), out2.shape
    assert jnp.allclose(out2, ref2, atol=1e-5, rtol=1e-5)

    print("KERNEL_OK")
</pallas_src>

<mosaic_0001>
module attributes {stable_mosaic.version = 11 : i64} {
  func.func @actor_kernel(%arg0: i32, %arg1: memref<5x128xf32, #tpu.memory_space<vmem>>, %arg2: memref<4x5xf32, #tpu.memory_space<vmem>>, %arg3: memref<4x1xf32, #tpu.memory_space<vmem>>, %arg4: memref<4x1xf32, #tpu.memory_space<smem>>, %arg5: memref<1x1xf32, #tpu.memory_space<smem>>, %arg6: memref<1x128xf32, #tpu.memory_space<vmem>>) attributes {dimension_semantics = [#tpu.dimension_semantics<parallel>], iteration_bounds = array<i64: 1>, scalar_prefetch = 0 : i64, scratch_operands = 0 : i64, tpu.core_type = #tpu.core_type<tc>, window_params = [{transform_indices = @transform_0, window_bounds = array<i64: 5, 128>}, {pipeline_mode = #tpu.pipeline_mode<synchronous>, transform_indices = @transform_1, window_bounds = array<i64: 4, 5>}, {pipeline_mode = #tpu.pipeline_mode<synchronous>, transform_indices = @transform_2, window_bounds = array<i64: 4, 1>}, {transform_indices = @transform_3, window_bounds = array<i64: 4, 1>}, {transform_indices = @transform_4, window_bounds = array<i64: 1, 1>}, {transform_indices = @transform_5, window_bounds = array<i64: 1, 128>}]} {
    %c0 = arith.constant 0 : index
    %c0_0 = arith.constant 0 : index
    %0 = vector.load %arg1[%c0, %c0_0] : memref<5x128xf32, #tpu.memory_space<vmem>>, vector<5x128xf32>
    %c0_1 = arith.constant 0 : index
    %c0_2 = arith.constant 0 : index
    %1 = vector.load %arg2[%c0_1, %c0_2] : memref<4x5xf32, #tpu.memory_space<vmem>>, vector<4x5xf32>
    %c0_3 = arith.constant 0 : index
    %c0_4 = arith.constant 0 : index
    %2 = vector.load %arg3[%c0_3, %c0_4] : memref<4x1xf32, #tpu.memory_space<vmem>>, vector<4x1xf32>
    %3 = vector.extract_strided_slice %1 {offsets = [0, 0], sizes = [4, 1], strides = [1, 1]} : vector<4x5xf32> to vector<4x1xf32>
    %4 = vector.extract_strided_slice %0 {offsets = [0, 0], sizes = [1, 128], strides = [1, 1]} : vector<5x128xf32> to vector<1x128xf32>
    %5 = vector.broadcast %3 : vector<4x1xf32> to vector<4x128xf32>
    %6 = vector.broadcast %4 : vector<1x128xf32> to vector<4x128xf32>
    %7 = arith.mulf %5, %6 : vector<4x128xf32>
    %8 = vector.broadcast %2 : vector<4x1xf32> to vector<4x128xf32>
    %9 = arith.addf %8, %7 : vector<4x128xf32>
    %10 = vector.extract_strided_slice %1 {offsets = [0, 1], sizes = [4, 1], strides = [1, 1]} : vector<4x5xf32> to vector<4x1xf32>
    %11 = vector.extract_strided_slice %0 {offsets = [1, 0], sizes = [1, 128], strides = [1, 1]} : vector<5x128xf32> to vector<1x128xf32>
    %12 = vector.broadcast %10 : vector<4x1xf32> to vector<4x128xf32>
    %13 = vector.broadcast %11 : vector<1x128xf32> to vector<4x128xf32>
    %14 = arith.mulf %12, %13 : vector<4x128xf32>
    %15 = arith.addf %9, %14 : vector<4x128xf32>
    %16 = vector.extract_strided_slice %1 {offsets = [0, 2], sizes = [4, 1], strides = [1, 1]} : vector<4x5xf32> to vector<4x1xf32>
    %17 = vector.extract_strided_slice %0 {offsets = [2, 0], sizes = [1, 128], strides = [1, 1]} : vector<5x128xf32> to vector<1x128xf32>
    %18 = vector.broadcast %16 : vector<4x1xf32> to vector<4x128xf32>
    %19 = vector.broadcast %17 : vector<1x128xf32> to vector<4x128xf32>
    %20 = arith.mulf %18, %19 : vector<4x128xf32>
    %21 = arith.addf %15, %20 : vector<4x128xf32>
    %22 = vector.extract_strided_slice %1 {offsets = [0, 3], sizes = [4, 1], strides = [1, 1]} : vector<4x5xf32> to vector<4x1xf32>
    %23 = vector.extract_strided_slice %0 {offsets = [3, 0], sizes = [1, 128], strides = [1, 1]} : vector<5x128xf32> to vector<1x128xf32>
    %24 = vector.broadcast %22 : vector<4x1xf32> to vector<4x128xf32>
    %25 = vector.broadcast %23 : vector<1x128xf32> to vector<4x128xf32>
    %26 = arith.mulf %24, %25 : vector<4x128xf32>
    %27 = arith.addf %21, %26 : vector<4x128xf32>
    %28 = vector.extract_strided_slice %1 {offsets = [0, 4], sizes = [4, 1], strides = [1, 1]} : vector<4x5xf32> to vector<4x1xf32>
    %29 = vector.extract_strided_slice %0 {offsets = [4, 0], sizes = [1, 128], strides = [1, 1]} : vector<5x128xf32> to vector<1x128xf32>
    %30 = vector.broadcast %28 : vector<4x1xf32> to vector<4x128xf32>
    %31 = vector.broadcast %29 : vector<1x128xf32> to vector<4x128xf32>
    %32 = arith.mulf %30, %31 : vector<4x128xf32>
    %33 = arith.addf %27, %32 : vector<4x128xf32>
    %cst = arith.constant 0.00999999977 : f32
    %34 = vector.broadcast %cst : f32 to vector<4x128xf32>
    %35 = arith.mulf %34, %33 : vector<4x128xf32>
    %36 = arith.maximumf %33, %35 : vector<4x128xf32>
    %c0_5 = arith.constant 0 : index
    %c0_6 = arith.constant 0 : index
    %37 = memref.load %arg5[%c0_5, %c0_6] : memref<1x1xf32, #tpu.memory_space<smem>>
    %38 = vector.broadcast %37 : f32 to vector<1x128xf32>
    %c0_7 = arith.constant 0 : index
    %c0_8 = arith.constant 0 : index
    %39 = memref.load %arg4[%c0_7, %c0_8] : memref<4x1xf32, #tpu.memory_space<smem>>
    %40 = vector.extract_strided_slice %36 {offsets = [0, 0], sizes = [1, 128], strides = [1, 1]} : vector<4x128xf32> to vector<1x128xf32>
    %41 = vector.broadcast %39 : f32 to vector<1x128xf32>
    %42 = arith.mulf %41, %40 : vector<1x128xf32>
    %43 = arith.addf %38, %42 : vector<1x128xf32>
    %c1 = arith.constant 1 : index
    %c0_9 = arith.constant 0 : index
    %44 = memref.load %arg4[%c1, %c0_9] : memref<4x1xf32, #tpu.memory_space<smem>>
    %45 = vector.extract_strided_slice %36 {offsets = [1, 0], sizes = [1, 128], strides = [1, 1]} : vector<4x128xf32> to vector<1x128xf32>
    %46 = vector.broadcast %44 : f32 to vector<1x128xf32>
    %47 = arith.mulf %46, %45 : vector<1x128xf32>
    %48 = arith.addf %43, %47 : vector<1x128xf32>
    %c2 = arith.constant 2 : index
    %c0_10 = arith.constant 0 : index
    %49 = memref.load %arg4[%c2, %c0_10] : memref<4x1xf32, #tpu.memory_space<smem>>
    %50 = vector.extract_strided_slice %36 {offsets = [2, 0], sizes = [1, 128], strides = [1, 1]} : vector<4x128xf32> to vector<1x128xf32>
    %51 = vector.broadcast %49 : f32 to vector<1x128xf32>
    %52 = arith.mulf %51, %50 : vector<1x128xf32>
    %53 = arith.addf %48, %52 : vector<1x128xf32>
    %c3 = arith.constant 3 : index
    %c0_11 = arith.constant 0 : index
    %54 = memref.load %arg4[%c3, %c0_11] : memref<4x1xf32, #tpu.memory_space<smem>>
    %55 = vector.extract_strided_slice %36 {offsets = [3, 0], sizes = [1, 128], strides = [1, 1]} : vector<4x128xf32> to vector<1x128xf32>
    %56 = vector.broadcast %54 : f32 to vector<1x128xf32>
    %57 = arith.mulf %56, %55 : vector<1x128xf32>
    %58 = arith.addf %53, %57 : vector<1x128xf32>
    %c0_12 = arith.constant 0 : index
    %c0_13 = arith.constant 0 : index
    %59 = vector.load %arg6[%c0_12, %c0_13] : memref<1x128xf32, #tpu.memory_space<vmem>>, vector<1x128xf32>
    tpu.vector_store %arg6[%c0_12, %c0_13], %58 {strides = array<i32>} : memref<1x128xf32, #tpu.memory_space<vmem>>, vector<1x128xf32>,
    return
  }
  func.func @transform_0(%arg0: i32) -> (i32, i32) {
    %c0_i32 = arith.constant 0 : i32
    %c0_i32_0 = arith.constant 0 : i32
    return %c0_i32, %arg0 : i32, i32
  }
  func.func @transform_1(%arg0: i32) -> (i32, i32) {
    %c0_i32 = arith.constant 0 : i32
    %c0_i32_0 = arith.constant 0 : i32
    %c0_i32_1 = arith.constant 0 : i32
    return %c0_i32, %c0_i32_0 : i32, i32
  }
  func.func @transform_2(%arg0: i32) -> (i32, i32) {
    %c0_i32 = arith.constant 0 : i32
    %c0_i32_0 = arith.constant 0 : i32
    %c0_i32_1 = arith.constant 0 : i32
    return %c0_i32, %c0_i32_0 : i32, i32
  }
  func.func @transform_3(%arg0: i32) -> (i32, i32) {
    %c0_i32 = arith.constant 0 : i32
    %c0_i32_0 = arith.constant 0 : i32
    %c0_i32_1 = arith.constant 0 : i32
    return %c0_i32, %c0_i32_0 : i32, i32
  }
  func.func @transform_4(%arg0: i32) -> (i32, i32) {
    %c0_i32 = arith.constant 0 : i32
    %c0_i32_0 = arith.constant 0 : i32
    %c0_i32_1 = arith.constant 0 : i32
    return %c0_i32, %c0_i32_0 : i32, i32
  }
  func.func @transform_5(%arg0: i32) -> (i32, i32) {
    %c0_i32 = arith.constant 0 : i32
    %c0_i32_0 = arith.constant 0 : i32
    return %c0_i32, %arg0 : i32, i32
  }
}

</mosaic_0001>

<bundles_post_ra>
// kernel: tpu_custom_call.1
= control target key start
LH: loop header
LB: loop body
LE: loop exit
PB: predicated region body
PF: predicated region fallthrough
CT: control target
= control target key end

     0   :  { %11 = vsyncpa [#allocation5], 0  ;;  %s257_s0 = inlined_call_operand.vmem [shape: f32[5,128], index: 0, kind: input, shape index: {}]   ;;  %s258_s1 = inlined_call_operand.vmem [shape: f32[4,5], index: 1, kind: input, shape index: {}]   ;;  %s259_s2 = inlined_call_operand.vmem [shape: f32[4,1], index: 2, kind: input, shape index: {}]   ;;  %s260_s3 = inlined_call_operand.vmem [shape: f32[4,1], index: 3, kind: input, shape index: {}]   ;;  %s261_s4 = inlined_call_operand.<no memory space> [shape: f32[1,1], index: 4, kind: input, shape index: {}]   ;;  %s262_s5 = inlined_call_operand.hbm [shape: f32[1,128], index: 5, kind: output, shape index: {}]  }
   0x1   :  { %12 = vsyncpa [#allocation4], 0  ;;  %s25_s20 = sshll.u32 %s260_s3, 4  ;;  %s26_s20 = int_to_ptr.vmem [resolvable:$true] %s25_s20 }
   0x2   :  { %s155_s21 = scalar_lea.vmem %s26_s20, 64  ;;  %p160_p1 = scmp.lt.s32.totalorder %s26_s20, %s26_s20 }
   0x3   :  { %p156_p0 = scmp.ne.s32.totalorder %s26_s20, %s155_s21  ;;  %p161_p2 = scmp.lt.s32.totalorder %s155_s21, %s155_s21 }
   0x5   :  { %p162_p3 = por %p161_p2, %p160_p1 }
   0x7   :  { %p163_p4 = pnand %p162_p3, %p156_p0 }
   0x9   :  { %166 = shalt.err (!%p163_p4)
}
   0xa   :  { %s193_s22 = smov [#allocation3]  }
   0xb   :  { %28 = dma.vmem_to_smem %s26_s20, 64, %s193_s22, [#allocation5]  }
   0xc   :  { %189 = dma.done.wait [#allocation5], 64  }
   0xd   :  { %190 = vsyncadd [#allocation5], 4294967232 }
   0xe   :  { %34 = sfence }
   0xf   :  { %v36_v0 = vld [vmem:[%s258_s1] sm:$0xf]  ;;  %v194_v1 = vmov 0   ;;  %v195_v2 = vmov 1   ;;  %v196_v4 = vmov 2   ;;  %v197_v5 = vmov 3  }
  0x10   :  { %149 = vset.pattern.permute.xlu0 %v194_v1  ;;  %150 = vset.pattern.permute.xlu1 %v195_v2  ;;  %v37_v3 = vld [vmem:[%s259_s2] sm:$0xf]  ;;  %v198_v6 = vmov 4   ;;  %v43_v7 = vlaneseq  ;;  %s98_s2 = sld [smem:[#allocation3]]  ;;  %v97_v41 = vstv %s261_s4  ;;  %s199_s6 = smov [#allocation6]  }
  0x11   :  { %40 = vperm.xlu0 %149, %v36_v0   ;;  %55 = vperm.xlu1 %150, %v36_v0   ;;  %v35_v10 = vld [vmem:[%s257_s0] sm:$0x1f]  ;;  %s139_s0 = sld [smem:[#allocation3 + $0x80]]  ;;  %s130_s7 = sshll.u32 %s199_s6, 4  ;;  %s131_s7 = int_to_ptr.vmem [resolvable:$true] %s130_s7 }
  0x12   :  { %v44_v8 = vshrl.u32 %v43_v7, 7  ;;  %s140_s27 = sld [smem:[#allocation3 + $0x100]]  ;;  %s167_s8 = scalar_lea.vmem %s131_s7, 16 }
  0x13   :  { %s141_s28 = sld [smem:[#allocation3 + $0x180]]  ;;  %p168_p5 = scmp.ne.s32.totalorder %s131_s7, %s167_s8 }
  0x14   :  { %v45_v9 = vsub.s32 0, %v44_v8  ;;  %v60_v11 = vsub.s32 1, %v44_v8  ;;  %v70_v12 = vsub.s32 2, %v44_v8  ;;  %v80_v18 = vsub.s32 3, %v44_v8  ;;  %s171_s9 = scalar_lea.vmem %s131_s7, 32  ;;  %p172_p6 = scmp.lt.s32.totalorder %s131_s7, %s131_s7 }
  0x15   :  { %50 = vperm.xlu0 %149, %v37_v3   ;;  %151 = vset.pattern.permute.xlu1 %v196_v4  ;;  %v90_v20 = vsub.s32 4, %v44_v8  ;;  %p173_p7 = scmp.lt.s32.totalorder %s171_s9, %s167_s8 }
  0x16   :  { %65 = vperm.xlu1 %151, %v36_v0   ;;  %v46_v13 = vrot.slane %v35_v10, %v45_v9  ;;  %v61_v16 = vrot.slane %v35_v10, %v60_v11  ;;  %v71_v17 = vrot.slane %v35_v10, %v70_v12  ;;  %v81_v26 = vrot.slane %v35_v10, %v80_v18 }
  0x17   :  { %v91_v28 = vrot.slane %v35_v10, %v90_v20  ;;  %v99_v37 = vstv %s98_s2  ;;  %v103_v38 = vstv %s139_s0  ;;  %p174_p8 = por %p173_p7, %p172_p6 }
  0x18   :  { %v110_v39 = vstv %s140_s27 }
  0x19   :  { %152 = vset.pattern.permute.xlu0 %v197_v5  ;;  %v117_v42 = vstv %s141_s28  ;;  %p175_p9 = pnand %p174_p8, %p168_p5 }
  0x1a   :  { %75 = vperm.xlu0 %152, %v36_v0   ;;  %153 = vset.pattern.permute.xlu1 %v198_v6 }
  0x1b   :  { %85 = vperm.xlu1 %153, %v36_v0  }
  0x1e   :  { %154 = vset.pattern.permute.xlu0 %v198_v6 }
  0x90   :  { %v41_v14 = vpop.permute.xlu0 %40  ;;  %v56_v15 = vpop.permute.xlu1 %55 }
  0x91   :  { %v47_v19 = vmul.f32 %v46_v13, %v41_v14  ;;  %v62_v22 = vmul.f32 %v61_v16, %v56_v15 }
  0x94   :  { %v51_v21 = vpop.permute.xlu0 %50 }
  0x95   :  { %v53_v23 = vadd.f32 %v51_v21, %v47_v19  ;;  %v66_v24 = vpop.permute.xlu1 %65 }
  0x96   :  { %v72_v25 = vmul.f32 %v71_v17, %v66_v24 }
  0x97   :  { %v63_v27 = vadd.f32 %v62_v22, %v53_v23 }
  0x99   :  { %v73_v29 = vadd.f32 %v72_v25, %v63_v27  ;;  %v76_v30 = vpop.permute.xlu0 %75 }
  0x9a   :  { %v82_v31 = vmul.f32 %v81_v26, %v76_v30  ;;  %v86_v32 = vpop.permute.xlu1 %85 }
  0x9b   :  { %v92_v33 = vmul.f32 %v91_v28, %v86_v32 }
  0x9c   :  { %v83_v34 = vadd.f32 %v82_v31, %v73_v29 }
  0x9e   :  { %v93_v35 = vadd.f32 %v92_v33, %v83_v34 }
  0xa0   :  { %v94_v36 = vmul.f32 0.01, %v93_v35 }
  0xa2   :  { %v95_v40 = vmax.f32 %v93_v35, %v94_v36 }
  0xa4   :  { %v100_v43 = vmul.f32 %v99_v37, %v95_v40  ;;  %v104_v44 = vmul.f32 %v103_v38, %v95_v40  ;;  %v111_v45 = vmul.f32 %v110_v39, %v95_v40  ;;  %v118_v48 = vmul.f32 %v117_v42, %v95_v40 }
  0xa6   :  { %v101_v46 = vadd.f32 %v100_v43, %v97_v41  ;;  %v106_v47 = vrot.slane %v104_v44, 1  ;;  %v113_v50 = vrot.slane %v111_v45, 2  ;;  %v120_v52 = vrot.slane %v118_v48, 3 }
  0xa8   :  { %v108_v49 = vadd.f32 %v106_v47, %v101_v46 }
  0xaa   :  { %v115_v51 = vadd.f32 %v113_v50, %v108_v49 }
  0xac   :  { %v122_v53 = vadd.f32 %v120_v52, %v115_v51 }
  0xae   :  { %123 = vst [vmem:[#allocation6] sm:$0x1] %v122_v53 }
  0xaf   :  { %178 = shalt.err (!%p175_p9)
}
  0xb0   :  { %s179_s11 = scalar_lea.hbm %s262_s5, 16 }
  0xb1   :  { %p180_p10 = scmp.ne.s32.totalorder %s262_s5, %s179_s11  ;;  %p183_p11 = scmp.lt.u32.totalorder %s179_s11, %s262_s5 }
  0xb3   :  { %p185_p12 = pnand %p183_p11, %p180_p10 }
  0xb5   :  { %188 = shalt.err (!%p185_p12)
}
  0xb6   :  { %133 = dma.vmem_to_hbm [thread:$0]  %s131_s7, 16, %s262_s5, [#allocation4]  }
  0xb7   :  { %191 = dma.done.wait [#allocation4], 16  }
  0xb8   :  { %192 = vsyncadd [#allocation4], 4294967280 }
  0xb9   :  { %137 = vsyncpa [#allocation4], 1 }
  0xba   :  { %138 = vsyncpa [#allocation5], 1 }

</bundles_post_ra>
